<compile_context>
chip_gen: v7x
topology: tpu7x:2x2x1
jax: 0.10.0
libtpu: 0.0.40
codegen_flags: <defaults>
</compile_context>

<pallas_src>
import math

import jax
import jax.numpy as jnp
from jax.experimental import pallas as pl
from jax.experimental.pallas import tpu as pltpu


# ---------------------------------------------------------------------------
# Kernels
# ---------------------------------------------------------------------------
def _ls_kernel(x_ref, g_ref, o_ref):
    # x_ref: (TM, TN) tile, g_ref: (1, TN) gamma tile broadcast over rows.
    o_ref[...] = x_ref[...] * g_ref[...]


def _ls_residual_kernel(x_ref, r_ref, g_ref, o_ref):
    # out = residual + x * gamma   (the `z + ls(...)` pattern in BasicBlock)
    o_ref[...] = r_ref[...] + x_ref[...] * g_ref[...]


# ---------------------------------------------------------------------------
# Layout planning
# ---------------------------------------------------------------------------
_VMEM_LIMIT_BYTES = 32 * 1024 * 1024  # explicit scoped limit; safe on v5e/v6e/v7x


def _max_block_bytes() -> int:
    """Per-buffer block cap: 4 MiB on v6e/v7x (fused worst case 24 MiB
    double-buffered, under the explicit 32 MiB scoped limit), 2 MiB on
    v5e/unknown where bigger tiles buy nothing."""
    try:
        kind = jax.devices()[0].device_kind.lower()
    except Exception:
        kind = ""
    if "v6" in kind or "v7" in kind:
        return 4 * 1024 * 1024
    return 2 * 1024 * 1024


def _plan(shape, dtype):
    """Flatten `shape` to (rows, lane) with a lane-dense last dim when cheap,
    then pick (tm, tn) tiles and the grid."""
    D = shape[-1]
    total = math.prod(shape)
    itemsize = jnp.dtype(dtype).itemsize
    sublane = 8 * max(1, 4 // itemsize)        # 8 f32 / 16 bf16 / 32 int8
    max_block = _max_block_bytes()

    # --- lane-dense flattening ------------------------------------------
    if D % 128 == 0:
        lane = D
    else:
        k = 128 // math.gcd(D, 128)            # lcm(D, 128) = k * D
        if k * D <= 512 and total % (k * D) == 0:
            lane = k * D                       # pack k tokens per row
        else:
            lane = D                           # fallback: masked stores
    rows = total // lane

    # --- lane (column) tiling: only for very wide 128-multiple lanes -----
    if lane % 128 == 0 and lane * itemsize * sublane > max_block:
        tn = max(128, ((max_block // (itemsize * sublane)) // 128) * 128)
    else:
        tn = lane

    # --- row tiling -------------------------------------------------------
    tm = max_block // max(1, tn * itemsize)
    tm = max(sublane, (tm // sublane) * sublane)
    if tm >= rows:
        if rows >= 2 * sublane and pl.cdiv(lane, tn) < 2:
            # Ensure >= 2 grid steps so both v7x TensorCores get work.
            half = -(-rows // 2)
            tm = min(rows, -(-half // sublane) * sublane)
        else:
            tm = rows                          # full-extent block (legal)

    grid = (pl.cdiv(rows, tm), pl.cdiv(lane, tn))
    return rows, lane, tm, tn, grid


def precompute_gamma_row(gamma: jax.Array, x_shape, x_dtype) -> jax.Array:
    """Cast + tile gamma to the (1, lane) row the kernel expects. gamma is a
    parameter: call this once per layer, not once per forward pass."""
    _, lane, _, _, _ = _plan(x_shape, x_dtype)
    D = gamma.shape[-1]
    g = gamma.astype(x_dtype)
    if lane != D:
        g = jnp.tile(g, lane // D)
    return g.reshape(1, lane)


# ---------------------------------------------------------------------------
# Launch helper + wrappers
# ---------------------------------------------------------------------------
def _launch(kernel, operands, gamma_row, rows, lane, tm, tn, grid, dtype,
            n_streams):
    itemsize = jnp.dtype(dtype).itemsize
    bytes_accessed = (n_streams + 1) * rows * lane * itemsize + lane * itemsize
    in_specs = [pl.BlockSpec((tm, tn), lambda i, j: (i, j))
                for _ in range(n_streams)]
    in_specs.append(pl.BlockSpec((1, tn), lambda i, j: (0, j)))

    # NOTE: for in-place use (x dead after the op) add
    # input_output_aliases={0: 0} to reuse x's HBM buffer; left off here since
    # the demo reuses x afterwards.
    return pl.pallas_call(
        kernel,
        out_shape=jax.ShapeDtypeStruct((rows, lane), dtype),
        grid_spec=pl.GridSpec(
            grid=grid,
            in_specs=in_specs,
            out_specs=pl.BlockSpec((tm, tn), lambda i, j: (i, j)),
        ),
        compiler_params=pltpu.CompilerParams(
            dimension_semantics=("parallel", "parallel"),
            vmem_limit_bytes=_VMEM_LIMIT_BYTES,
        ),
        cost_estimate=pl.CostEstimate(
            flops=n_streams * rows * lane,
            transcendentals=0,
            bytes_accessed=bytes_accessed,
        ),
    )(*operands, gamma_row)


def layer_scale(x: jax.Array, gamma: jax.Array = None,
                gamma_row: jax.Array = None) -> jax.Array:
    """LayerScale.forward: x * gamma, gamma broadcast over the last dim."""
    rows, lane, tm, tn, grid = _plan(x.shape, x.dtype)
    if gamma_row is None:
        assert gamma is not None and gamma.shape == (x.shape[-1],)
        gamma_row = precompute_gamma_row(gamma, x.shape, x.dtype)
    x2 = x.reshape(rows, lane)
    out = _launch(_ls_kernel, (x2,), gamma_row, rows, lane, tm, tn, grid,
                  x.dtype, n_streams=1)
    return out.reshape(x.shape)


def layer_scale_residual(x: jax.Array, residual: jax.Array,
                         gamma: jax.Array = None,
                         gamma_row: jax.Array = None) -> jax.Array:
    """Fused `residual + x * gamma` (the ls + residual-add pattern used in
    BasicBlock / AttentionBlock)."""
    assert x.shape == residual.shape and x.dtype == residual.dtype
    rows, lane, tm, tn, grid = _plan(x.shape, x.dtype)
    if gamma_row is None:
        assert gamma is not None and gamma.shape == (x.shape[-1],)
        gamma_row = precompute_gamma_row(gamma, x.shape, x.dtype)
    x2 = x.reshape(rows, lane)
    r2 = residual.reshape(rows, lane)
    out = _launch(_ls_residual_kernel, (x2, r2), gamma_row, rows, lane, tm, tn,
                  grid, x.dtype, n_streams=2)
    return out.reshape(x.shape)


# ---------------------------------------------------------------------------
# Demo / correctness check
# ---------------------------------------------------------------------------
if __name__ == "__main__":
    key = jax.random.PRNGKey(0)
    k1, k2 = jax.random.split(key)

    B, N, D = 2, 8, 32            # small token tensor: (batch, seq, hidden)
    init_values = 1e-5

    x = jax.random.normal(k1, (B, N, D), dtype=jnp.float32)
    residual = jax.random.normal(k2, (B, N, D), dtype=jnp.float32)
    # Deterministic parameter init exactly as in __init__: gamma = init_values * ones(dim)
    gamma = jnp.full((D,), init_values, dtype=jnp.float32)

    # gamma is a parameter -> precompute its lane-dense row once per layer.
    g_row = precompute_gamma_row(gamma, x.shape, x.dtype)

    # 1) plain LayerScale forward
    out = layer_scale(x, gamma_row=g_row)
    jax.block_until_ready(out)
    ref = x * gamma
    assert out.shape == ref.shape and out.dtype == ref.dtype
    assert jnp.allclose(out, ref, atol=1e-6, rtol=1e-6), "layer_scale mismatch"

    # 2) fused LayerScale + residual add (as used inside BasicBlock/AttentionBlock)
    out_r = layer_scale_residual(x, residual, gamma_row=g_row)
    jax.block_until_ready(out_r)
    ref_r = residual + x * gamma
    assert out_r.shape == ref_r.shape and out_r.dtype == ref_r.dtype
    assert jnp.allclose(out_r, ref_r, atol=1e-6, rtol=1e-6), "fused mismatch"

    # 3) larger lane-aligned shape exercising row tiling + 2-step grid
    B2, N2, D2 = 2, 1024, 256
    xl = jax.random.normal(k1, (B2, N2, D2), dtype=jnp.float32)
    gl = jnp.full((D2,), init_values, dtype=jnp.float32)
    outl = layer_scale(xl, gl)
    jax.block_until_ready(outl)
    assert jnp.allclose(outl, xl * gl, atol=1e-6, rtol=1e-6), "tiled mismatch"

    # 4) D that neither divides nor is divided by 128 -> lcm lane packing (D=96 -> lane=384)
    B3, N3, D3 = 2, 16, 96
    xm = jax.random.normal(k2, (B3, N3, D3), dtype=jnp.float32)
    gm = jnp.full((D3,), init_values, dtype=jnp.float32)
    outm = layer_scale(xm, gm)
    jax.block_until_ready(outm)
    assert jnp.allclose(outm, xm * gm, atol=1e-6, rtol=1e-6), "lcm-lane mismatch"

    # 5) bf16 path exercising 16-row sublane granularity
    B4, N4, D4 = 2, 64, 128
    xb = jax.random.normal(k1, (B4, N4, D4), dtype=jnp.float32).astype(jnp.bfloat16)
    gb = jnp.full((D4,), init_values, dtype=jnp.float32)
    outb = layer_scale(xb, gb)
    jax.block_until_ready(outb)
    refb = xb * gb.astype(jnp.bfloat16)
    assert outb.dtype == jnp.bfloat16
    assert jnp.allclose(outb.astype(jnp.float32), refb.astype(jnp.float32),
                        atol=1e-6, rtol=1e-2), "bf16 mismatch"

    print("KERNEL_OK")
</pallas_src>

<mosaic_0001>
module attributes {stable_mosaic.version = 11 : i64} {
  func.func @_ls_kernel(%arg0: i32, %arg1: i32, %arg2: memref<4x128xf32, #tpu.memory_space<vmem>>, %arg3: memref<1x128xf32, #tpu.memory_space<vmem>>, %arg4: memref<4x128xf32, #tpu.memory_space<vmem>>) attributes {dimension_semantics = [#tpu.dimension_semantics<parallel>, #tpu.dimension_semantics<parallel>], iteration_bounds = array<i64: 1, 1>, scalar_prefetch = 0 : i64, scratch_operands = 0 : i64, tpu.core_type = #tpu.core_type<tc>, window_params = [{transform_indices = @transform_0, window_bounds = array<i64: 4, 128>}, {transform_indices = @transform_1, window_bounds = array<i64: 1, 128>}, {transform_indices = @transform_2, window_bounds = array<i64: 4, 128>}]} {
    %c0 = arith.constant 0 : index
    %c0_0 = arith.constant 0 : index
    %0 = vector.load %arg2[%c0, %c0_0] : memref<4x128xf32, #tpu.memory_space<vmem>>, vector<4x128xf32>
    %c0_1 = arith.constant 0 : index
    %c0_2 = arith.constant 0 : index
    %1 = vector.load %arg3[%c0_1, %c0_2] : memref<1x128xf32, #tpu.memory_space<vmem>>, vector<1x128xf32>
    %2 = vector.broadcast %1 : vector<1x128xf32> to vector<4x128xf32>
    %3 = arith.mulf %0, %2 : vector<4x128xf32>
    %c0_3 = arith.constant 0 : index
    %c0_4 = arith.constant 0 : index
    %4 = vector.load %arg4[%c0_3, %c0_4] : memref<4x128xf32, #tpu.memory_space<vmem>>, vector<4x128xf32>
    tpu.vector_store %arg4[%c0_3, %c0_4], %3 {strides = array<i32>} : memref<4x128xf32, #tpu.memory_space<vmem>>, vector<4x128xf32>,
    return
  }
  func.func @transform_0(%arg0: i32, %arg1: i32) -> (i32, i32) {
    %c0_i32 = arith.constant 0 : i32
    return %arg0, %arg1 : i32, i32
  }
  func.func @transform_1(%arg0: i32, %arg1: i32) -> (i32, i32) {
    %c0_i32 = arith.constant 0 : i32
    %c0_i32_0 = arith.constant 0 : i32
    return %c0_i32, %arg1 : i32, i32
  }
  func.func @transform_2(%arg0: i32, %arg1: i32) -> (i32, i32) {
    %c0_i32 = arith.constant 0 : i32
    return %arg0, %arg1 : i32, i32
  }
}

</mosaic_0001>

<bundles_post_ra>
// kernel: tpu_custom_call.1
= control target key start
LH: loop header
LB: loop body
LE: loop exit
PB: predicated region body
PF: predicated region fallthrough
CT: control target
= control target key end

     0   :  { %7 = vsyncpa [#allocation3], 0  ;;  %s144_s0 = inlined_call_operand.hbm [shape: f32[4,128], index: 0, kind: input, shape index: {}]   ;;  %s145_s1 = inlined_call_operand.vmem [shape: f32[1,128], index: 1, kind: input, shape index: {}]   ;;  %s146_s2 = inlined_call_operand.hbm [shape: f32[4,128], index: 2, kind: output, shape index: {}]  }
   0x1   :  { %8 = vsyncpa [#allocation4], 0  ;;  %s100_s9 = smov [#allocation2]   ;;  %s52_s13 = scalar_lea.hbm %s144_s0, 64 }
   0x2   :  { %s15_s10 = sshll.u32 %s100_s9, 4  ;;  %p53_p0 = scmp.ne.s32.totalorder %s144_s0, %s52_s13  ;;  %s16_s10 = int_to_ptr.vmem [resolvable:$true] %s15_s10 }
   0x3   :  { %p56_p1 = scmp.lt.u32.totalorder %s52_s13, %s144_s0 }
   0x5   :  { %p58_p2 = pnand %p56_p1, %p53_p0 }
   0x7   :  { %61 = shalt.err (!%p58_p2)
}
   0x8   :  { %s62_s18 = scalar_lea.vmem %s16_s10, 64  ;;  %p67_p4 = scmp.lt.s32.totalorder %s16_s10, %s16_s10 }
   0x9   :  { %p63_p3 = scmp.ne.s32.totalorder %s16_s10, %s62_s18  ;;  %p68_p5 = scmp.lt.s32.totalorder %s62_s18, %s62_s18 }
   0xb   :  { %p69_p6 = por %p68_p5, %p67_p4 }
   0xd   :  { %p70_p7 = pnand %p69_p6, %p63_p3 }
   0xf   :  { %73 = shalt.err (!%p70_p7)
}
  0x10   :  { %18 = dma.hbm_to_vmem [thread:$0]  %s144_s0, 64, %s16_s10, [#allocation3]  }
  0x11   :  { %96 = dma.done.wait [#allocation3], 64  }
  0x12   :  { %97 = vsyncadd [#allocation3], 4294967232  ;;  %s101_s21 = smov [#allocation5]   ;;  %v24_v0 = vld [vmem:[#allocation2] sm:$0xf] }
  0x13   :  { %s40_s22 = sshll.u32 %s101_s21, 4  ;;  %v49_v1 = vld [vmem:[%s145_s1] ss:$0 sm:$0xff]  ;;  %s41_s22 = int_to_ptr.vmem [resolvable:$true] %s40_s22 }
  0x14   :  { %v32_v2 = vmul.f32 %v49_v1, %v24_v0  ;;  %s74_s25 = scalar_lea.vmem %s41_s22, 64  ;;  %p79_p9 = scmp.lt.s32.totalorder %s41_s22, %s41_s22 }
  0x15   :  { %p75_p8 = scmp.ne.s32.totalorder %s41_s22, %s74_s25  ;;  %p80_p10 = scmp.lt.s32.totalorder %s74_s25, %s74_s25 }
  0x16   :  { %33 = vst [vmem:[#allocation5] sm:$0xf] %v32_v2 }
  0x17   :  { %p81_p11 = por %p80_p10, %p79_p9 }
  0x19   :  { %p82_p12 = pnand %p81_p11, %p75_p8 }
  0x1b   :  { %85 = shalt.err (!%p82_p12)
}
  0x1c   :  { %s86_s27 = scalar_lea.hbm %s146_s2, 64 }
  0x1d   :  { %p87_p13 = scmp.ne.s32.totalorder %s146_s2, %s86_s27  ;;  %p90_p0 = scmp.lt.u32.totalorder %s86_s27, %s146_s2 }
  0x1f   :  { %p92_p1 = pnand %p90_p0, %p87_p13 }
  0x21   :  { %95 = shalt.err (!%p92_p1)
}
  0x22   :  { %43 = dma.vmem_to_hbm [thread:$0]  %s41_s22, 64, %s146_s2, [#allocation4]  }
  0x23   :  { %98 = dma.done.wait [#allocation4], 64  }
  0x24   :  { %99 = vsyncadd [#allocation4], 4294967232 }
  0x25   :  { %47 = vsyncpa [#allocation3], 1 }
  0x26   :  { %48 = vsyncpa [#allocation4], 1 }

</bundles_post_ra>
